<compile_context>
chip_gen: v7x
topology: tpu7x:2x2x1
jax: 0.10.0
libtpu: 0.0.40
codegen_flags: <defaults>
</compile_context>

<pallas_src>
import math
from functools import partial

import jax
import jax.numpy as jnp
from jax.experimental import pallas as pl
from jax.experimental.pallas import tpu as pltpu

_LANE = 128
# Per-block footprint target: 2 arrays x 2 pipeline buffers x 4 MiB = 16 MiB,
# which fits the scoped-VMEM budget on every generation (incl. v7x's 64 MiB).
_MAX_BLOCK_BYTES = 4 * 1024 * 1024
# 32 MiB scoped VMEM: explicit raise over v5e's 16 MiB default, equal to the
# v6e/v7x defaults, safely below physical VMEM on all three generations.
_VMEM_LIMIT_BYTES = 32 * 1024 * 1024


def _copy_kernel(x_ref, o_ref):
    # The "compute" of a view/reshape is an identity copy of the flat buffer.
    o_ref[...] = x_ref[...]


def _round_down(x, m):
    return (x // m) * m


def _choose_slab(total, itemsize):
    """Factor `total` into (rows, cols): cols a multiple of 128 (lane-dense,
    unmasked stores), rows preferably a multiple of the dtype sublane pack
    (8 for f32, 16 for bf16, 32 for int8)."""
    sub = 8 * max(1, 4 // itemsize)
    if total % _LANE != 0:
        return None
    candidates = (8192, 4096, 2048, 1024, 512, 256, 128)
    for cols in candidates:                      # prefer full sublane occupancy
        if total % cols == 0 and (total // cols) % sub == 0:
            return total // cols, cols, sub
    for cols in candidates:                      # any lane-dense factorization
        if total % cols == 0:
            return total // cols, cols, sub
    return None  # unreachable when total % 128 == 0 (cols=128 always divides)


def _pallas_copy(x_flat, block_shape, index_map, grid):
    nbytes = x_flat.size * x_flat.dtype.itemsize
    return pl.pallas_call(
        _copy_kernel,
        out_shape=jax.ShapeDtypeStruct(x_flat.shape, x_flat.dtype),
        grid_spec=pltpu.PrefetchScalarGridSpec(
            num_scalar_prefetch=0,
            grid=grid,
            in_specs=[pl.BlockSpec(block_shape, index_map)],
            out_specs=pl.BlockSpec(block_shape, index_map),
        ),
        # Output bytes are identical to the input: let XLA alias the buffers
        # instead of allocating + writing a second independent HBM copy.
        input_output_aliases={0: 0},
        compiler_params=pltpu.CompilerParams(
            dimension_semantics=("parallel",) * len(grid),
            vmem_limit_bytes=_VMEM_LIMIT_BYTES,
        ),
        cost_estimate=pl.CostEstimate(
            flops=0, transcendentals=0, bytes_accessed=2 * nbytes),
    )(x_flat)


@partial(jax.jit, static_argnames=("shape",))
def pallas_reshape(x, shape):
    """Equivalent of torch Reshape(shape).forward: x.view(x.size(0), *shape)."""
    shape = tuple(int(s) for s in shape)
    b = x.shape[0]
    feat = math.prod(x.shape[1:])
    if feat != math.prod(shape):
        raise ValueError(
            f"cannot reshape {x.shape} to (batch, {shape}): "
            f"{feat} != {math.prod(shape)}")

    total = b * feat
    itemsize = x.dtype.itemsize

    slab = _choose_slab(total, itemsize)
    if slab is not None:
        rows, cols, sub = slab
        # Row-major flatten: identical element order to torch .view().
        x_flat = x.reshape(rows, cols)
        max_rows = max(sub, _round_down(_MAX_BLOCK_BYTES // (cols * itemsize), sub))
        rows_tile = min(rows, max_rows)
        # Give the (parallel) grid axis >= 2 steps when possible so v7x's two
        # TensorCores both get copy work; harmless on v5e/v6e (1 TC).
        if rows_tile == rows and rows >= 2 * sub:
            rows_tile = max(sub, _round_down((rows + 1) // 2, sub))
        grid = (pl.cdiv(rows, rows_tile),)
        out_flat = _pallas_copy(x_flat, (rows_tile, cols), lambda i: (i, 0), grid)
    else:
        # total not a multiple of 128: ragged lane tiling of a (1, total) slab
        # (Pallas masks the edge block); full-extent single block when small.
        x_flat = x.reshape(1, total)
        col_tile = _round_down(_MAX_BLOCK_BYTES // itemsize, _LANE)
        if total <= col_tile:
            block, grid = (1, total), (1,)
        else:
            block, grid = (1, col_tile), (pl.cdiv(total, col_tile),)
        out_flat = _pallas_copy(x_flat, block, lambda i: (0, i), grid)

    # Final target shape is metadata-only, matching torch .view().
    return out_flat.reshape((b,) + shape)


if __name__ == "__main__":
    key = jax.random.PRNGKey(0)

    # NCHW activation as used inside the MuseGAN generator Sequential:
    # (B=2, C=4, H=16, W=16) viewed as (B, 8, 128).
    x = jax.random.normal(key, (2, 4, 16, 16), dtype=jnp.float32)
    target_shape = (8, 128)                       # 4*16*16 == 8*128 == 1024
    ref = x.reshape(x.shape[0], *target_shape)    # == torch .view semantics
    out = jax.block_until_ready(pallas_reshape(x, shape=target_shape))
    assert out.shape == (2, 8, 128), out.shape
    assert out.dtype == x.dtype
    assert bool(jnp.array_equal(out, ref))

    # Multi-block path (grid > 1, 8-row-aligned lane-dense slab).
    x2 = jax.random.normal(key, (2, 64, 32, 32), dtype=jnp.float32)
    ref2 = x2.reshape(x2.shape[0], 64, 1024)
    out2 = jax.block_until_ready(pallas_reshape(x2, shape=(64, 1024)))
    assert bool(jnp.array_equal(out2, ref2))

    # Ragged fallback path (total not a multiple of 128).
    x3 = jax.random.normal(key, (2, 3, 5, 7), dtype=jnp.float32)
    ref3 = x3.reshape(x3.shape[0], 105)
    out3 = jax.block_until_ready(pallas_reshape(x3, shape=(105,)))
    assert bool(jnp.array_equal(out3, ref3))

    print("KERNEL_OK")
</pallas_src>

<mosaic_0001>
module attributes {stable_mosaic.version = 11 : i64} {
  func.func @_copy_kernel(%arg0: i32, %arg1: memref<8x256xf32, #tpu.memory_space<vmem>>, %arg2: memref<8x256xf32, #tpu.memory_space<vmem>>) attributes {dimension_semantics = [#tpu.dimension_semantics<parallel>], iteration_bounds = array<i64: 1>, scalar_prefetch = 0 : i64, scratch_operands = 0 : i64, tpu.core_type = #tpu.core_type<tc>, window_params = [{transform_indices = @transform_0, window_bounds = array<i64: 8, 256>}, {transform_indices = @transform_1, window_bounds = array<i64: 8, 256>}]} {
    %c0 = arith.constant 0 : index
    %c0_0 = arith.constant 0 : index
    %0 = vector.load %arg1[%c0, %c0_0] : memref<8x256xf32, #tpu.memory_space<vmem>>, vector<8x256xf32>
    %c0_1 = arith.constant 0 : index
    %c0_2 = arith.constant 0 : index
    %1 = vector.load %arg2[%c0_1, %c0_2] : memref<8x256xf32, #tpu.memory_space<vmem>>, vector<8x256xf32>
    tpu.vector_store %arg2[%c0_1, %c0_2], %0 {strides = array<i32>} : memref<8x256xf32, #tpu.memory_space<vmem>>, vector<8x256xf32>,
    return
  }
  func.func @transform_0(%arg0: i32) -> (i32, i32) {
    %c0_i32 = arith.constant 0 : i32
    %c0_i32_0 = arith.constant 0 : i32
    return %arg0, %c0_i32 : i32, i32
  }
  func.func @transform_1(%arg0: i32) -> (i32, i32) {
    %c0_i32 = arith.constant 0 : i32
    %c0_i32_0 = arith.constant 0 : i32
    return %arg0, %c0_i32 : i32, i32
  }
}

</mosaic_0001>

<bundles_post_ra>
// kernel: pallas_reshape.1
= control target key start
LH: loop header
LB: loop body
LE: loop exit
PB: predicated region body
PF: predicated region fallthrough
CT: control target
= control target key end

     0   :  { %s38_s0 = inlined_call_operand.vmem [shape: f32[8,256], index: 0, kind: input, shape index: {}, may-alias: {0,1}]   ;;  %s39_s1 = inlined_call_operand.vmem [shape: f32[8,256], index: 1, kind: output, shape index: {}, may-alias: {0,1}]  }
   0x1   :  { %v8_v0 = vld [vmem:[%s38_s0] sm:$0xff]  ;;  %v9_v1 = vld [vmem:[%s38_s0 + $0x8] sm:$0xff] }
   0x2   :  { %10 = vst [vmem:[%s39_s1] sm:$0xff] %v8_v0  ;;  %11 = vst [vmem:[%s39_s1 + $0x8] sm:$0xff] %v9_v1 }

</bundles_post_ra>
